<compile_context>
chip_gen: v6e
topology: v6e:2x2x1
jax: 0.10.0
libtpu: 0.0.40
codegen_flags: <defaults>
</compile_context>

<pallas_src>
import functools

import numpy as np

import jax
import jax.numpy as jnp
from jax.experimental import pallas as pl
from jax.experimental.pallas import tpu as pltpu


# ----------------------------------------------------------------------------
# Shared math: used both inside the Pallas kernels and by the pure-JAX reference.
# ----------------------------------------------------------------------------
def _ln_math(x, g, b, eps):
    xf = x.astype(jnp.float32)
    mu = jnp.mean(xf, axis=-1, keepdims=True)
    var = jnp.mean(jnp.square(xf - mu), axis=-1, keepdims=True)
    y = (xf - mu) * jax.lax.rsqrt(var + eps)
    return (y * g.astype(jnp.float32) + b.astype(jnp.float32)).astype(x.dtype)


def _mlp_math(x, w1, b1, w2, b2):
    h = jnp.dot(x, w1, preferred_element_type=jnp.float32) + b1.astype(jnp.float32)
    h = jax.nn.gelu(h, approximate=False)  # nn.GELU default = exact (erf) GELU
    y = jnp.dot(h.astype(x.dtype), w2, preferred_element_type=jnp.float32)
    y = y + b2.astype(jnp.float32)
    return y.astype(x.dtype)


def _window_attn_math(x, w_qkv, b_qkv, w_proj, b_proj, rpb, mask, num_heads, scale):
    """x: (W, N, C) windows.  rpb: (num_heads, N, N).  mask: (W, N, N) or None."""
    Wn, N, C = x.shape
    hd = C // num_heads
    x2 = x.reshape(Wn * N, C)
    qkv = jnp.dot(x2, w_qkv, preferred_element_type=jnp.float32)
    qkv = qkv + b_qkv.astype(jnp.float32)  # (W*N, 3C); columns laid out [q|k|v] x heads
    heads = []
    for h in range(num_heads):  # small static loop -> unrolled, only 3-D batched matmuls
        q = qkv[:, h * hd:(h + 1) * hd].reshape(Wn, N, hd) * scale
        k = qkv[:, C + h * hd:C + (h + 1) * hd].reshape(Wn, N, hd)
        v = qkv[:, 2 * C + h * hd:2 * C + (h + 1) * hd].reshape(Wn, N, hd)
        attn = jnp.einsum("wnd,wmd->wnm", q, k, preferred_element_type=jnp.float32)
        attn = attn + rpb[h][None]
        if mask is not None:
            attn = attn + mask
        attn = jax.nn.softmax(attn, axis=-1)
        o = jnp.einsum("wnm,wmd->wnd", attn, v, preferred_element_type=jnp.float32)
        heads.append(o.reshape(Wn * N, hd))
    o = jnp.concatenate(heads, axis=-1).astype(x.dtype)  # (W*N, C)
    y = jnp.dot(o, w_proj, preferred_element_type=jnp.float32) + b_proj.astype(jnp.float32)
    return y.reshape(Wn, N, C).astype(x.dtype)


# ----------------------------------------------------------------------------
# Pallas kernel bodies
# ----------------------------------------------------------------------------
def _ln_kernel(x_ref, g_ref, b_ref, o_ref, *, eps):
    o_ref[...] = _ln_math(x_ref[...], g_ref[...], b_ref[...], eps)


def _mlp_kernel(x_ref, w1_ref, b1_ref, w2_ref, b2_ref, o_ref):
    o_ref[...] = _mlp_math(x_ref[...], w1_ref[...], b1_ref[...], w2_ref[...], b2_ref[...])


def _attn_kernel(x_ref, wqkv_ref, bqkv_ref, wproj_ref, bproj_ref, rpb_ref, *rest,
                 num_heads, scale, has_mask):
    if has_mask:
        mask_ref, o_ref = rest
        mask = mask_ref[...]
    else:
        (o_ref,) = rest
        mask = None
    o_ref[...] = _window_attn_math(x_ref[...], wqkv_ref[...], bqkv_ref[...],
                                   wproj_ref[...], bproj_ref[...], rpb_ref[...],
                                   mask, num_heads, scale)


def _res_dp_kernel(keep_ref, short_ref, branch_ref, o_ref, *, inv_keep_prob):
    # keep_ref: SMEM (scalar prefetch), one {0,1} keep decision per batch sample.
    b = pl.program_id(0)
    s = keep_ref[b].astype(short_ref.dtype) * jnp.asarray(inv_keep_prob, short_ref.dtype)
    # No f32 upcast: scale is exact (0 or 1/keep_prob); multiply in native dtype.
    o_ref[...] = short_ref[...] + branch_ref[...] * s


# ----------------------------------------------------------------------------
# Pallas wrappers
# ----------------------------------------------------------------------------
def _tile(n, target, align):
    """Largest multiple of `align` that divides n and is <= target; else n (full extent)."""
    if n <= target:
        return n
    t = (target // align) * align
    while t >= align:
        if n % t == 0:
            return t
        t -= align
    return n


def layer_norm(x2d, g, b, eps=1e-5):
    R, C = x2d.shape
    tr = _tile(R, 512, 8)
    return pl.pallas_call(
        functools.partial(_ln_kernel, eps=eps),
        out_shape=jax.ShapeDtypeStruct((R, C), x2d.dtype),
        grid_spec=pltpu.PrefetchScalarGridSpec(
            num_scalar_prefetch=0,
            grid=(R // tr,),
            in_specs=[pl.BlockSpec((tr, C), lambda i: (i, 0)),
                      pl.BlockSpec((1, C), lambda i: (0, 0)),
                      pl.BlockSpec((1, C), lambda i: (0, 0))],
            out_specs=pl.BlockSpec((tr, C), lambda i: (i, 0))),
        compiler_params=pltpu.CompilerParams(dimension_semantics=("parallel",)),
    )(x2d, g, b)


def mlp(x2d, w1, b1, w2, b2):
    R, C = x2d.shape
    Hd = w1.shape[1]
    tr = _tile(R, 256, 8)
    return pl.pallas_call(
        _mlp_kernel,
        out_shape=jax.ShapeDtypeStruct((R, C), x2d.dtype),
        grid_spec=pltpu.PrefetchScalarGridSpec(
            num_scalar_prefetch=0,
            grid=(R // tr,),
            in_specs=[pl.BlockSpec((tr, C), lambda i: (i, 0)),
                      pl.BlockSpec((C, Hd), lambda i: (0, 0)),
                      pl.BlockSpec((1, Hd), lambda i: (0, 0)),
                      pl.BlockSpec((Hd, C), lambda i: (0, 0)),
                      pl.BlockSpec((1, C), lambda i: (0, 0))],
            out_specs=pl.BlockSpec((tr, C), lambda i: (i, 0))),
        compiler_params=pltpu.CompilerParams(dimension_semantics=("parallel",)),
    )(x2d, w1, b1, w2, b2)


def window_attention(xw, w_qkv, b_qkv, w_proj, b_proj, rpb, mask, num_heads):
    nWtot, N, C = xw.shape
    scale = (C // num_heads) ** -0.5
    tw = _tile(nWtot, 8, 1)          # several windows per grid step (amortize step cost)
    has_mask = mask is not None
    in_specs = [pl.BlockSpec((tw, N, C), lambda i: (i, 0, 0)),
                pl.BlockSpec(w_qkv.shape, lambda i: (0, 0)),
                pl.BlockSpec(b_qkv.shape, lambda i: (0, 0)),
                pl.BlockSpec(w_proj.shape, lambda i: (0, 0)),
                pl.BlockSpec(b_proj.shape, lambda i: (0, 0)),
                pl.BlockSpec(rpb.shape, lambda i: (0, 0, 0))]
    args = [xw, w_qkv, b_qkv, w_proj, b_proj, rpb]
    if has_mask:
        in_specs.append(pl.BlockSpec((tw, N, N), lambda i: (i, 0, 0)))
        args.append(mask)
    return pl.pallas_call(
        functools.partial(_attn_kernel, num_heads=num_heads, scale=scale,
                          has_mask=has_mask),
        out_shape=jax.ShapeDtypeStruct((nWtot, N, C), xw.dtype),
        grid_spec=pltpu.PrefetchScalarGridSpec(
            num_scalar_prefetch=0,
            grid=(nWtot // tw,),
            in_specs=in_specs,
            out_specs=pl.BlockSpec((tw, N, C), lambda i: (i, 0, 0))),
        compiler_params=pltpu.CompilerParams(dimension_semantics=("parallel",)),
    )(*args)


def residual_droppath(shortcut, branch, keep, inv_keep_prob):
    """out[b] = shortcut[b] + (keep[b] / keep_prob) * branch[b].

    DropPath fused into the residual add (no standalone DropPath HBM round trip);
    lane-dense (B, L*C) layout; keep mask via scalar prefetch; fully parallel grid."""
    B, L, C = shortcut.shape
    LC = L * C
    tl = _tile(LC, 8192, 128)  # lane tile: multiple of 128 (or full extent)
    out = pl.pallas_call(
        functools.partial(_res_dp_kernel, inv_keep_prob=float(inv_keep_prob)),
        out_shape=jax.ShapeDtypeStruct((B, LC), shortcut.dtype),
        grid_spec=pltpu.PrefetchScalarGridSpec(
            num_scalar_prefetch=1,   # per-sample keep mask lives in SMEM
            grid=(B, LC // tl),
            in_specs=[pl.BlockSpec((1, tl), lambda b, t, keep: (b, t)),
                      pl.BlockSpec((1, tl), lambda b, t, keep: (b, t))],
            out_specs=pl.BlockSpec((1, tl), lambda b, t, keep: (b, t))),
        compiler_params=pltpu.CompilerParams(
            dimension_semantics=("parallel", "parallel")),
    )(keep, shortcut.reshape(B, LC), branch.reshape(B, LC))
    return out.reshape(B, L, C)


def residual_droppath_ref(shortcut, branch, keep, inv_keep_prob):
    s = keep.astype(shortcut.dtype)[:, None, None] * jnp.asarray(inv_keep_prob,
                                                                 shortcut.dtype)
    return shortcut + branch * s


def make_keep_mask(key, batch, drop_prob, training):
    """Per-sample Bernoulli keep decision matching drop_path_f: floor(keep_prob + U)."""
    if (not training) or drop_prob <= 0.0:
        return jnp.ones((batch,), jnp.int32), 1.0
    keep_prob = 1.0 - float(drop_prob)
    if keep_prob <= 0.0:  # drop_prob == 1: drop everything, avoid 1/0 -> NaN
        return jnp.zeros((batch,), jnp.int32), 0.0
    u = jax.random.uniform(key, (batch,), jnp.float32)
    keep = jnp.floor(keep_prob + u).astype(jnp.int32)
    return keep, 1.0 / keep_prob


# ----------------------------------------------------------------------------
# Layout plumbing (plain JAX / numpy, static)
# ----------------------------------------------------------------------------
def window_partition_j(x, ws):
    B, H, W, C = x.shape
    x = x.reshape(B, H // ws, ws, W // ws, ws, C)
    x = jnp.transpose(x, (0, 1, 3, 2, 4, 5))
    return x.reshape(B * (H // ws) * (W // ws), ws, ws, C)


def window_reverse_j(windows, ws, H, W):
    B = windows.shape[0] // ((H * W) // (ws * ws))
    x = windows.reshape(B, H // ws, W // ws, ws, ws, -1)
    x = jnp.transpose(x, (0, 1, 3, 2, 4, 5))
    return x.reshape(B, H, W, -1)


def relative_position_index_np(ws):
    coords = np.stack(np.meshgrid(np.arange(ws), np.arange(ws), indexing="ij"))
    cf = coords.reshape(2, -1)
    rel = (cf[:, :, None] - cf[:, None, :]).transpose(1, 2, 0).astype(np.int64)
    rel[:, :, 0] += ws - 1
    rel[:, :, 1] += ws - 1
    rel[:, :, 0] *= 2 * ws - 1
    return rel.sum(-1)  # (N, N)


def create_attn_mask_np(H, W, ws, shift):
    Hp = int(np.ceil(H / ws)) * ws
    Wp = int(np.ceil(W / ws)) * ws
    img_mask = np.zeros((1, Hp, Wp, 1), np.float32)
    slices = (slice(0, -ws), slice(-ws, -shift), slice(-shift, None))
    cnt = 0
    for hs in slices:
        for wsl in slices:
            img_mask[:, hs, wsl, :] = cnt
            cnt += 1
    m = img_mask.reshape(1, Hp // ws, ws, Wp // ws, ws, 1)
    m = m.transpose(0, 1, 3, 2, 4, 5).reshape(-1, ws * ws)  # (nW, N)
    diff = m[:, None, :] - m[:, :, None]
    return jnp.asarray(np.where(diff != 0, -100.0, 0.0).astype(np.float32))  # (nW,N,N)


# ----------------------------------------------------------------------------
# SwinTransformerBlock / BasicLayer forward
# ----------------------------------------------------------------------------
def swin_block_forward(x, H, W, p, attn_mask, shift, cfg, keep1, keep2, use_pallas):
    B, L, C = x.shape
    ws = cfg["window_size"]
    nh = cfg["num_heads"]
    inv_kp = cfg["inv_keep_prob"]
    N = ws * ws

    # relative position bias gather (tiny, static indices -> plain JAX)
    rpb = jnp.take(p["rpb_table"], cfg["rel_pos_index"], axis=0)
    rpb = rpb.reshape(N, N, nh).transpose(2, 0, 1)  # (nh, N, N)

    shortcut = x
    x2 = x.reshape(B * L, C)
    x2 = (layer_norm(x2, p["norm1_g"], p["norm1_b"]) if use_pallas
          else _ln_math(x2, p["norm1_g"], p["norm1_b"], 1e-5))
    xs = x2.reshape(B, H, W, C)

    if shift > 0:
        xs = jnp.roll(xs, shift=(-shift, -shift), axis=(1, 2))
        mask = jnp.tile(attn_mask, (B, 1, 1))  # (B*nW, N, N), aligned with window tiles
    else:
        mask = None

    xw = window_partition_j(xs, ws).reshape(-1, N, C)  # (B*nW, N, C)
    if use_pallas:
        aw = window_attention(xw, p["w_qkv"], p["b_qkv"], p["w_proj"], p["b_proj"],
                              rpb, mask, nh)
    else:
        aw = _window_attn_math(xw, p["w_qkv"], p["b_qkv"], p["w_proj"], p["b_proj"],
                               rpb, mask, nh, (C // nh) ** -0.5)
    xs = window_reverse_j(aw.reshape(-1, ws, ws, C), ws, H, W)
    if shift > 0:
        xs = jnp.roll(xs, shift=(shift, shift), axis=(1, 2))
    x = xs.reshape(B, L, C)

    # residual 1 + DropPath (fused kernel)
    x = (residual_droppath(shortcut, x, keep1, inv_kp) if use_pallas
         else residual_droppath_ref(shortcut, x, keep1, inv_kp))

    # MLP branch
    y2 = x.reshape(B * L, C)
    y2 = (layer_norm(y2, p["norm2_g"], p["norm2_b"]) if use_pallas
          else _ln_math(y2, p["norm2_g"], p["norm2_b"], 1e-5))
    y2 = (mlp(y2, p["w_fc1"], p["b_fc1"], p["w_fc2"], p["b_fc2"]) if use_pallas
          else _mlp_math(y2, p["w_fc1"], p["b_fc1"], p["w_fc2"], p["b_fc2"]))
    y = y2.reshape(B, L, C)

    # residual 2 + DropPath (fused kernel)
    x = (residual_droppath(x, y, keep2, inv_kp) if use_pallas
         else residual_droppath_ref(x, y, keep2, inv_kp))
    return x


def basic_layer_forward(x, H, W, blocks_params, cfg, keep_masks, use_pallas=True):
    ws = cfg["window_size"]
    shift_size = ws // 2
    assert H % ws == 0 and W % ws == 0, "H, W must be multiples of window_size"
    attn_mask = create_attn_mask_np(H, W, ws, shift_size)  # (nW, N, N)
    for i, p in enumerate(blocks_params):
        shift = 0 if i % 2 == 0 else shift_size
        keep1, keep2 = keep_masks[i]
        x = swin_block_forward(x, H, W, p, attn_mask, shift, cfg, keep1, keep2,
                               use_pallas)
    # TODO(synk): `downsample` (PatchMerging) is not defined in the reference code;
    # this implements BasicLayer(downsample=None), so (H, W) are returned unchanged.
    # TODO(synk): nn.Dropout paths (drop / attn_drop > 0) not implemented (defaults 0.0).
    return x, H, W


# ----------------------------------------------------------------------------
# Parameter init (layout: weights stored as (in_features, out_features))
# ----------------------------------------------------------------------------
def init_block_params(key, dim, num_heads, window_size, mlp_ratio):
    hidden = int(dim * mlp_ratio)
    ks = jax.random.split(key, 5)

    def dense(k, fin, fout):
        return jax.random.normal(k, (fin, fout), jnp.float32) * (fin ** -0.5)

    return dict(
        norm1_g=jnp.ones((1, dim), jnp.float32),
        norm1_b=jnp.zeros((1, dim), jnp.float32),
        norm2_g=jnp.ones((1, dim), jnp.float32),
        norm2_b=jnp.zeros((1, dim), jnp.float32),
        w_qkv=dense(ks[0], dim, 3 * dim),
        b_qkv=jnp.zeros((1, 3 * dim), jnp.float32),
        w_proj=dense(ks[1], dim, dim),
        b_proj=jnp.zeros((1, dim), jnp.float32),
        w_fc1=dense(ks[2], dim, hidden),
        b_fc1=jnp.zeros((1, hidden), jnp.float32),
        w_fc2=dense(ks[3], hidden, dim),
        b_fc2=jnp.zeros((1, dim), jnp.float32),
        rpb_table=jax.random.normal(
            ks[4], ((2 * window_size - 1) ** 2, num_heads), jnp.float32) * 0.02,
    )


if __name__ == "__main__":
    B, H, W = 2, 8, 8
    dim, num_heads, window_size, depth = 32, 4, 4, 2
    mlp_ratio = 4.0
    drop_path_prob = 0.2
    training = True
    L = H * W

    root = jax.random.PRNGKey(0)
    kx, kp, kd = jax.random.split(root, 3)
    x = jax.random.normal(kx, (B, L, dim), jnp.float32)
    blocks_params = [init_block_params(k, dim, num_heads, window_size, mlp_ratio)
                     for k in jax.random.split(kp, depth)]

    # Independent DropPath decision per residual per block (no correlated drops).
    keep_masks = []
    inv_kp = 1.0
    dkeys = jax.random.split(kd, depth * 2)
    for i in range(depth):
        k1, ikp = make_keep_mask(dkeys[2 * i], B, drop_path_prob, training)
        k2, _ = make_keep_mask(dkeys[2 * i + 1], B, drop_path_prob, training)
        keep_masks.append((k1, k2))
        inv_kp = ikp

    cfg = dict(
        window_size=window_size,
        num_heads=num_heads,
        inv_keep_prob=inv_kp,
        rel_pos_index=jnp.asarray(
            relative_position_index_np(window_size).reshape(-1), jnp.int32),
    )

    out, Ho, Wo = basic_layer_forward(x, H, W, blocks_params, cfg, keep_masks,
                                      use_pallas=True)
    out = jax.block_until_ready(out)

    # Pure-JAX reference (same math, same keep masks) for a correctness sanity check.
    ref, _, _ = basic_layer_forward(x, H, W, blocks_params, cfg, keep_masks,
                                    use_pallas=False)
    ref = jax.block_until_ready(ref)

    assert out.shape == (B, L, dim) and (Ho, Wo) == (H, W)
    assert bool(jnp.all(jnp.isfinite(out)))
    err = float(jnp.max(jnp.abs(out - ref)))
    assert err < 1e-3, f"Pallas vs reference mismatch: max abs err {err}"

    print("KERNEL_OK")
</pallas_src>

<mosaic_0001>
module attributes {stable_mosaic.version = 11 : i64} {
  func.func @_ln_kernel(%arg0: i32, %arg1: memref<128x32xf32, #tpu.memory_space<vmem>>, %arg2: memref<1x32xf32, #tpu.memory_space<vmem>>, %arg3: memref<1x32xf32, #tpu.memory_space<vmem>>, %arg4: memref<128x32xf32, #tpu.memory_space<vmem>>) attributes {dimension_semantics = [#tpu.dimension_semantics<parallel>], iteration_bounds = array<i64: 1>, scalar_prefetch = 0 : i64, scratch_operands = 0 : i64, tpu.core_type = #tpu.core_type<tc>, window_params = [{transform_indices = @transform_0, window_bounds = array<i64: 128, 32>}, {pipeline_mode = #tpu.pipeline_mode<synchronous>, transform_indices = @transform_1, window_bounds = array<i64: 1, 32>}, {pipeline_mode = #tpu.pipeline_mode<synchronous>, transform_indices = @transform_2, window_bounds = array<i64: 1, 32>}, {transform_indices = @transform_3, window_bounds = array<i64: 128, 32>}]} {
    %c0 = arith.constant 0 : index
    %c0_0 = arith.constant 0 : index
    %0 = vector.load %arg1[%c0, %c0_0] : memref<128x32xf32, #tpu.memory_space<vmem>>, vector<128x32xf32>
    %c0_1 = arith.constant 0 : index
    %c0_2 = arith.constant 0 : index
    %1 = vector.load %arg2[%c0_1, %c0_2] : memref<1x32xf32, #tpu.memory_space<vmem>>, vector<1x32xf32>
    %c0_3 = arith.constant 0 : index
    %c0_4 = arith.constant 0 : index
    %2 = vector.load %arg3[%c0_3, %c0_4] : memref<1x32xf32, #tpu.memory_space<vmem>>, vector<1x32xf32>
    %cst = arith.constant dense<0.000000e+00> : vector<128xf32>
    %3 = vector.multi_reduction <add>, %0, %cst [1] : vector<128x32xf32> to vector<128xf32>
    %4 = vector.shape_cast %3 : vector<128xf32> to vector<128x1xf32>
    %cst_5 = arith.constant 3.200000e+01 : f32
    %5 = vector.broadcast %cst_5 : f32 to vector<128x1xf32>
    %6 = arith.divf %4, %5 : vector<128x1xf32>
    %7 = vector.broadcast %6 : vector<128x1xf32> to vector<128x32xf32>
    %8 = arith.subf %0, %7 : vector<128x32xf32>
    %9 = arith.mulf %8, %8 : vector<128x32xf32>
    %cst_6 = arith.constant dense<0.000000e+00> : vector<128xf32>
    %10 = vector.multi_reduction <add>, %9, %cst_6 [1] : vector<128x32xf32> to vector<128xf32>
    %11 = vector.shape_cast %10 : vector<128xf32> to vector<128x1xf32>
    %cst_7 = arith.constant 3.200000e+01 : f32
    %12 = vector.broadcast %cst_7 : f32 to vector<128x1xf32>
    %13 = arith.divf %11, %12 : vector<128x1xf32>
    %14 = vector.broadcast %6 : vector<128x1xf32> to vector<128x32xf32>
    %15 = arith.subf %0, %14 : vector<128x32xf32>
    %cst_8 = arith.constant 9.99999974E-6 : f32
    %16 = vector.broadcast %cst_8 : f32 to vector<128x1xf32>
    %17 = arith.addf %13, %16 : vector<128x1xf32>
    %18 = math.rsqrt %17 : vector<128x1xf32>
    %19 = vector.broadcast %18 : vector<128x1xf32> to vector<128x32xf32>
    %20 = arith.mulf %15, %19 : vector<128x32xf32>
    %21 = vector.broadcast %1 : vector<1x32xf32> to vector<128x32xf32>
    %22 = arith.mulf %20, %21 : vector<128x32xf32>
    %23 = vector.broadcast %2 : vector<1x32xf32> to vector<128x32xf32>
    %24 = arith.addf %22, %23 : vector<128x32xf32>
    %c0_9 = arith.constant 0 : index
    %c0_10 = arith.constant 0 : index
    %25 = vector.load %arg4[%c0_9, %c0_10] : memref<128x32xf32, #tpu.memory_space<vmem>>, vector<128x32xf32>
    tpu.vector_store %arg4[%c0_9, %c0_10], %24 {strides = array<i32>} : memref<128x32xf32, #tpu.memory_space<vmem>>, vector<128x32xf32>,
    return
  }
  func.func @transform_0(%arg0: i32) -> (i32, i32) {
    %c0_i32 = arith.constant 0 : i32
    %c0_i32_0 = arith.constant 0 : i32
    return %arg0, %c0_i32 : i32, i32
  }
  func.func @transform_1(%arg0: i32) -> (i32, i32) {
    %c0_i32 = arith.constant 0 : i32
    %c0_i32_0 = arith.constant 0 : i32
    %c0_i32_1 = arith.constant 0 : i32
    return %c0_i32, %c0_i32_0 : i32, i32
  }
  func.func @transform_2(%arg0: i32) -> (i32, i32) {
    %c0_i32 = arith.constant 0 : i32
    %c0_i32_0 = arith.constant 0 : i32
    %c0_i32_1 = arith.constant 0 : i32
    return %c0_i32, %c0_i32_0 : i32, i32
  }
  func.func @transform_3(%arg0: i32) -> (i32, i32) {
    %c0_i32 = arith.constant 0 : i32
    %c0_i32_0 = arith.constant 0 : i32
    return %arg0, %c0_i32 : i32, i32
  }
}

</mosaic_0001>

<bundles_post_ra>
// kernel: tpu_custom_call.1
= control target key start
LH: loop header
LB: loop body
LE: loop exit
PB: predicated region body
PF: predicated region fallthrough
CT: control target
= control target key end

     0   :  { %vm32_vm0 = vcmask 261120   ;;  %s666_s0 = inlined_call_operand.vmem [shape: f32[128,32], index: 0, kind: input, shape index: {}]   ;;  %s667_s1 = inlined_call_operand.vmem [shape: f32[1,32], index: 1, kind: input, shape index: {}]   ;;  %s668_s2 = inlined_call_operand.vmem [shape: f32[1,32], index: 2, kind: input, shape index: {}]   ;;  %s669_s3 = inlined_call_operand.vmem [shape: f32[128,32], index: 3, kind: output, shape index: {}]  }
   0x1   :  { %v14_v0 = vld [vmem:[%s666_s0] sm:$0xff]  ;;  %v16_v1 = vld [vmem:[%s666_s0 + $0x10] sm:$0xff]  ;;  %v15_v2 = vld [vmem:[%s666_s0 + $0x8] sm:$0xff] }
   0x2   :  { %v33_v3 = vsel %vm32_vm0, %v14_v0, 0.0  ;;  %v39_v4 = vsel %vm32_vm0, %v16_v1, 0.0  ;;  %v17_v5 = vld [vmem:[%s666_s0 + $0x18] sm:$0xff]  ;;  %v36_v6 = vsel %vm32_vm0, %v15_v2, 0.0  ;;  %v18_v8 = vld [vmem:[%s666_s0 + $0x20] sm:$0xff]  ;;  %v19_v9 = vld [vmem:[%s666_s0 + $0x28] sm:$0xff] }
   0x3   :  { %34 = vadd.xlane.f32.xlu0 %v33_v3  ;;  %40 = vadd.xlane.f32.xlu1 %v39_v4  ;;  %v42_v7 = vsel %vm32_vm0, %v17_v5, 0.0  ;;  %v45_v10 = vsel %vm32_vm0, %v18_v8, 0.0  ;;  %v48_v11 = vsel %vm32_vm0, %v19_v9, 0.0  ;;  %v387_v12 = vld [vmem:[%s666_s0 + $0x30] sm:$0xff]  ;;  %v392_v13 = vld [vmem:[%s666_s0 + $0x38] sm:$0xff]  ;;  %v401_v16 = vld [vmem:[%s666_s0 + $0x40] sm:$0xff] }
   0x4   :  { %v51_v14 = vsel %vm32_vm0, %v387_v12, 0.0  ;;  %v54_v15 = vsel %vm32_vm0, %v392_v13, 0.0  ;;  %v406_v17 = vld [vmem:[%s666_s0 + $0x48] sm:$0xff]  ;;  %v57_v18 = vsel %vm32_vm0, %v401_v16, 0.0  ;;  %v415_v20 = vld [vmem:[%s666_s0 + $0x50] sm:$0xff]  ;;  %v420_v21 = vld [vmem:[%s666_s0 + $0x58] sm:$0xff] }
   0x5   :  { %v60_v19 = vsel %vm32_vm0, %v406_v17, 0.0  ;;  %v63_v22 = vsel %vm32_vm0, %v415_v20, 0.0  ;;  %v66_v23 = vsel %vm32_vm0, %v420_v21, 0.0  ;;  %v429_v24 = vld [vmem:[%s666_s0 + $0x60] sm:$0xff]  ;;  %v434_v25 = vld [vmem:[%s666_s0 + $0x68] sm:$0xff]  ;;  %v443_v28 = vld [vmem:[%s666_s0 + $0x70] sm:$0xff] }
   0x6   :  { %v69_v26 = vsel %vm32_vm0, %v429_v24, 0.0  ;;  %v72_v27 = vsel %vm32_vm0, %v434_v25, 0.0  ;;  %v448_v29 = vld [vmem:[%s666_s0 + $0x78] sm:$0xff]  ;;  %v75_v30 = vsel %vm32_vm0, %v443_v28, 0.0 }
   0x7   :  { %37 = vadd.xlane.f32.xlu0 %v36_v6  ;;  %43 = vadd.xlane.f32.xlu1 %v42_v7  ;;  %v78_v31 = vsel %vm32_vm0, %v448_v29, 0.0 }
   0xb   :  { %46 = vadd.xlane.f32.xlu0 %v45_v10  ;;  %49 = vadd.xlane.f32.xlu1 %v48_v11 }
   0xf   :  { %52 = vadd.xlane.f32.xlu0 %v51_v14  ;;  %55 = vadd.xlane.f32.xlu1 %v54_v15 }
  0x13   :  { %58 = vadd.xlane.f32.xlu0 %v57_v18  ;;  %61 = vadd.xlane.f32.xlu1 %v60_v19 }
  0x17   :  { %64 = vadd.xlane.f32.xlu0 %v63_v22  ;;  %67 = vadd.xlane.f32.xlu1 %v66_v23 }
  0x1b   :  { %70 = vadd.xlane.f32.xlu0 %v69_v26  ;;  %73 = vadd.xlane.f32.xlu1 %v72_v27 }
  0x1f   :  { %76 = vadd.xlane.f32.xlu0 %v75_v30  ;;  %79 = vadd.xlane.f32.xlu1 %v78_v31 }
  0x8c   :  { %v35_v32 = vpop.xlane.xlu0 %34  ;;  %v41_v33 = vpop.xlane.xlu1 %40 }
  0x8d   :  { %v82_v34 = vmul.f32 0.03125, %v35_v32  ;;  %v84_v35 = vmul.f32 0.03125, %v41_v33 }
  0x8f   :  { %v454_v36 = vsub.f32 %v14_v0, %v82_v34  ;;  %v456_v37 = vsub.f32 %v16_v1, %v84_v35 }
  0x90   :  { %v38_v38 = vpop.xlane.xlu0 %37  ;;  %v44_v39 = vpop.xlane.xlu1 %43 }
  0x91   :  { %v83_v40 = vmul.f32 0.03125, %v38_v38  ;;  %v85_v41 = vmul.f32 0.03125, %v44_v39  ;;  %v114_v42 = vmul.f32 %v454_v36, %v454_v36  ;;  %v116_v43 = vmul.f32 %v456_v37, %v456_v37 }
  0x93   :  { %v462_v44 = vsub.f32 %v15_v2, %v83_v40  ;;  %v464_v45 = vsub.f32 %v17_v5, %v85_v41  ;;  %v130_v46 = vsel %vm32_vm0, %v114_v42, 0.0  ;;  %v136_v49 = vsel %vm32_vm0, %v116_v43, 0.0 }
  0x94   :  { %131 = vadd.xlane.f32.xlu0 %v130_v46  ;;  %v47_v47 = vpop.xlane.xlu0 %46  ;;  %v50_v48 = vpop.xlane.xlu1 %49 }
  0x95   :  { %v86_v50 = vmul.f32 0.03125, %v47_v47  ;;  %v87_v51 = vmul.f32 0.03125, %v50_v48  ;;  %v115_v52 = vmul.f32 %v462_v44, %v462_v44  ;;  %v117_v53 = vmul.f32 %v464_v45, %v464_v45 }
  0x97   :  { %v472_v54 = vsub.f32 %v18_v8, %v86_v50  ;;  %v474_v55 = vsub.f32 %v19_v9, %v87_v51  ;;  %v133_v56 = vsel %vm32_vm0, %v115_v52, 0.0  ;;  %v139_v59 = vsel %vm32_vm0, %v117_v53, 0.0 }
  0x98   :  { %137 = vadd.xlane.f32.xlu0 %v136_v49  ;;  %134 = vadd.xlane.f32.xlu1 %v133_v56  ;;  %v53_v57 = vpop.xlane.xlu0 %52  ;;  %v56_v58 = vpop.xlane.xlu1 %55 }
  0x99   :  { %v88_v60 = vmul.f32 0.03125, %v53_v57  ;;  %v89_v61 = vmul.f32 0.03125, %v56_v58  ;;  %v118_v62 = vmul.f32 %v472_v54, %v472_v54  ;;  %v119_v63 = vmul.f32 %v474_v55, %v474_v55 }
  0x9b   :  { %v483_v0 = vsub.f32 %v387_v12, %v88_v60  ;;  %v486_v1 = vsub.f32 %v392_v13, %v89_v61  ;;  %v142_v2 = vsel %vm32_vm0, %v118_v62, 0.0  ;;  %v145_v5 = vsel %vm32_vm0, %v119_v63, 0.0 }
  0x9c   :  { %140 = vadd.xlane.f32.xlu1 %v139_v59  ;;  %143 = vadd.xlane.f32.xlu0 %v142_v2  ;;  %v59_v3 = vpop.xlane.xlu0 %58  ;;  %v62_v4 = vpop.xlane.xlu1 %61 }
  0x9d   :  { %v90_v6 = vmul.f32 0.03125, %v59_v3  ;;  %v91_v7 = vmul.f32 0.03125, %v62_v4  ;;  %v120_v8 = vmul.f32 %v483_v0, %v483_v0  ;;  %v121_v9 = vmul.f32 %v486_v1, %v486_v1 }
  0x9f   :  { %v495_v10 = vsub.f32 %v401_v16, %v90_v6  ;;  %v498_v11 = vsub.f32 %v406_v17, %v91_v7  ;;  %v148_v12 = vsel %vm32_vm0, %v120_v8, 0.0  ;;  %v151_v15 = vsel %vm32_vm0, %v121_v9, 0.0 }
  0xa0   :  { %146 = vadd.xlane.f32.xlu1 %v145_v5  ;;  %149 = vadd.xlane.f32.xlu0 %v148_v12  ;;  %v65_v13 = vpop.xlane.xlu0 %64  ;;  %v68_v14 = vpop.xlane.xlu1 %67 }
  0xa1   :  { %v92_v18 = vmul.f32 0.03125, %v65_v13  ;;  %v93_v19 = vmul.f32 0.03125, %v68_v14  ;;  %v122_v22 = vmul.f32 %v495_v10, %v495_v10  ;;  %v123_v16 = vmul.f32 %v498_v11, %v498_v11 }
  0xa3   :  { %v507_v23 = vsub.f32 %v415_v20, %v92_v18  ;;  %v510_v17 = vsub.f32 %v420_v21, %v93_v19  ;;  %v154_v26 = vsel %vm32_vm0, %v122_v22, 0.0  ;;  %v157_v31 = vsel %vm32_vm0, %v123_v16, 0.0 }
  0xa4   :  { %152 = vadd.xlane.f32.xlu1 %v151_v15  ;;  %155 = vadd.xlane.f32.xlu0 %v154_v26  ;;  %v71_v27 = vpop.xlane.xlu0 %70  ;;  %v74_v30 = vpop.xlane.xlu1 %73  ;;  %v547_v26 = vld [vmem:[%s667_s1] ss:$0 sm:$0xff] }
  0xa5   :  { %v94_v32 = vmul.f32 0.03125, %v71_v27  ;;  %v95_v33 = vmul.f32 0.03125, %v74_v30  ;;  %v124_v34 = vmul.f32 %v507_v23, %v507_v23  ;;  %v125_v20 = vmul.f32 %v510_v17, %v510_v17 }
  0xa7   :  { %v519_v35 = vsub.f32 %v429_v24, %v94_v32  ;;  %v522_v21 = vsub.f32 %v434_v25, %v95_v33  ;;  %v160_v38 = vsel %vm32_vm0, %v124_v34, 0.0  ;;  %v163_v41 = vsel %vm32_vm0, %v125_v20, 0.0  ;;  %v553_v32 = vld [vmem:[%s668_s2] ss:$0 sm:$0xff] }
  0xa8   :  { %158 = vadd.xlane.f32.xlu1 %v157_v31  ;;  %161 = vadd.xlane.f32.xlu0 %v160_v38  ;;  %v77_v39 = vpop.xlane.xlu0 %76  ;;  %v80_v40 = vpop.xlane.xlu1 %79 }
  0xa9   :  { %v96_v42 = vmul.f32 0.03125, %v77_v39  ;;  %v97_v43 = vmul.f32 0.03125, %v80_v40  ;;  %v126_v46 = vmul.f32 %v519_v35, %v519_v35  ;;  %v127_v24 = vmul.f32 %v522_v21, %v522_v21 }
  0xab   :  { %v531_v47 = vsub.f32 %v443_v28, %v96_v42  ;;  %v534_v25 = vsub.f32 %v448_v29, %v97_v43  ;;  %v166_v48 = vsel %vm32_vm0, %v126_v46, 0.0  ;;  %v169_v49 = vsel %vm32_vm0, %v127_v24, 0.0 }
  0xac   :  { %164 = vadd.xlane.f32.xlu1 %v163_v41  ;;  %167 = vadd.xlane.f32.xlu0 %v166_v48 }
  0xad   :  { %v128_v50 = vmul.f32 %v531_v47, %v531_v47  ;;  %v129_v51 = vmul.f32 %v534_v25, %v534_v25 }
  0xaf   :  { %v172_v52 = vsel %vm32_vm0, %v128_v50, 0.0  ;;  %v175_v28 = vsel %vm32_vm0, %v129_v51, 0.0 }
  0xb0   :  { %170 = vadd.xlane.f32.xlu1 %v169_v49  ;;  %173 = vadd.xlane.f32.xlu0 %v172_v52 }
  0xb4   :  { %176 = vadd.xlane.f32.xlu1 %v175_v28 }
 0x11d   :  { %v132_v29 = vpop.xlane.xlu0 %131 }
 0x11e   :  { %v178_v53 = vmul.f32 0.03125, %v132_v29 }
 0x120   :  { %v194_v56 = vadd.f32 1e-05, %v178_v53 }
 0x121   :  { %v135_v57 = vpop.xlane.xlu1 %134  ;;  %v138_v58 = vpop.xlane.xlu0 %137 }
 0x122   :  { %308 = vrsqrt.f32 %v194_v56  ;;  %v179_v59 = vmul.f32 0.03125, %v135_v57  ;;  %v180_v60 = vmul.f32 0.03125, %v138_v58 }
 0x124   :  { %v195_v61 = vadd.f32 1e-05, %v179_v59  ;;  %v196_v62 = vadd.f32 1e-05, %v180_v60 }
 0x125   :  { %v141_v63 = vpop.xlane.xlu1 %140  ;;  %v144_v2 = vpop.xlane.xlu0 %143 }
 0x126   :  { %310 = vrsqrt.f32 %v195_v61  ;;  %v181_v3 = vmul.f32 0.03125, %v141_v63  ;;  %v182_v4 = vmul.f32 0.03125, %v144_v2 }
 0x127   :  { %312 = vrsqrt.f32 %v196_v62 }
 0x128   :  { %v197_v5 = vadd.f32 1e-05, %v181_v3  ;;  %v198_v6 = vadd.f32 1e-05, %v182_v4 }
 0x129   :  { %v147_v7 = vpop.xlane.xlu1 %146  ;;  %v150_v8 = vpop.xlane.xlu0 %149 }
 0x12a   :  { %314 = vrsqrt.f32 %v197_v5  ;;  %v183_v9 = vmul.f32 0.03125, %v147_v7  ;;  %v184_v12 = vmul.f32 0.03125, %v150_v8 }
 0x12b   :  { %316 = vrsqrt.f32 %v198_v6 }
 0x12c   :  { %v199_v13 = vadd.f32 1e-05, %v183_v9  ;;  %v200_v14 = vadd.f32 1e-05, %v184_v12 }
 0x12d   :  { %v153_v15 = vpop.xlane.xlu1 %152  ;;  %v156_v18 = vpop.xlane.xlu0 %155 }
 0x12e   :  { %318 = vrsqrt.f32 %v199_v13  ;;  %v185_v19 = vmul.f32 0.03125, %v153_v15  ;;  %v186_v22 = vmul.f32 0.03125, %v156_v18 }
 0x12f   :  { %v309_v16 = vpop.eup %308  ;;  %320 = vrsqrt.f32 %v200_v14 }
 0x130   :  { %v226_v27 = vmul.f32 %v309_v16, %v454_v36  ;;  %v201_v30 = vadd.f32 1e-05, %v185_v19  ;;  %v202_v31 = vadd.f32 1e-05, %v186_v22 }
 0x131   :  { %v159_v33 = vpop.xlane.xlu1 %158  ;;  %v162_v34 = vpop.xlane.xlu0 %161 }
 0x132   :  { %v248_v20 = vmul.f32 %v547_v26, %v226_v27  ;;  %322 = vrsqrt.f32 %v201_v30  ;;  %v187_v38 = vmul.f32 0.03125, %v159_v33  ;;  %v188_v39 = vmul.f32 0.03125, %v162_v34 }
 0x133   :  { %v311_v40 = vpop.eup %310  ;;  %324 = vrsqrt.f32 %v202_v31 }
 0x134   :  { %v313_v41 = vpop.eup %312  ;;  %v270_v42 = vadd.f32 %v553_v32, %v248_v20  ;;  %v227_v36 = vmul.f32 %v311_v40, %v462_v44  ;;  %v203_v43 = vadd.f32 1e-05, %v187_v38  ;;  %v204_v46 = vadd.f32 1e-05, %v188_v39 }
 0x135   :  { %v228_v24 = vmul.f32 %v313_v41, %v456_v37  ;;  %v165_v48 = vpop.xlane.xlu1 %164  ;;  %v168_v49 = vpop.xlane.xlu0 %167 }
 0x136   :  { %286 = vst.msk [vmem:[%s669_s3] sm:$0xff] %vm32_vm0, %v270_v42  ;;  %v249_v50 = vmul.f32 %v547_v26, %v227_v36  ;;  %326 = vrsqrt.f32 %v203_v43  ;;  %v189_v51 = vmul.f32 0.03125, %v165_v48  ;;  %v190_v52 = vmul.f32 0.03125, %v168_v49 }
 0x137   :  { %v315_v28 = vpop.eup %314  ;;  %v250_v29 = vmul.f32 %v547_v26, %v228_v24  ;;  %328 = vrsqrt.f32 %v204_v46 }
 0x138   :  { %v317_v44 = vpop.eup %316  ;;  %v271_v53 = vadd.f32 %v553_v32, %v249_v50  ;;  %v229_v37 = vmul.f32 %v315_v28, %v464_v45  ;;  %v205_v56 = vadd.f32 1e-05, %v189_v51  ;;  %v206_v57 = vadd.f32 1e-05, %v190_v52 }
 0x139   :  { %v272_v58 = vadd.f32 %v553_v32, %v250_v29  ;;  %v230_v59 = vmul.f32 %v317_v44, %v472_v54  ;;  %v171_v60 = vpop.xlane.xlu1 %170  ;;  %v174_v61 = vpop.xlane.xlu0 %173 }
 0x13a   :  { %287 = vst.msk [vmem:[%s669_s3 + $0x8] sm:$0xff] %vm32_vm0, %v271_v53  ;;  %v251_v62 = vmul.f32 %v547_v26, %v229_v37  ;;  %330 = vrsqrt.f32 %v205_v56  ;;  %v191_v63 = vmul.f32 0.03125, %v171_v60  ;;  %v192_v2 = vmul.f32 0.03125, %v174_v61 }
 0x13b   :  { %v319_v3 = vpop.eup %318  ;;  %288 = vst.msk [vmem:[%s669_s3 + $0x10] sm:$0xff] %vm32_vm0, %v272_v58  ;;  %v252_v45 = vmul.f32 %v547_v26, %v230_v59  ;;  %332 = vrsqrt.f32 %v206_v57 }
 0x13c   :  { %v321_v54 = vpop.eup %320  ;;  %v273_v4 = vadd.f32 %v553_v32, %v251_v62  ;;  %v231_v5 = vmul.f32 %v319_v3, %v474_v55  ;;  %v207_v6 = vadd.f32 1e-05, %v191_v63  ;;  %v208_v7 = vadd.f32 1e-05, %v192_v2 }
 0x13d   :  { %v274_v8 = vadd.f32 %v553_v32, %v252_v45  ;;  %v232_v9 = vmul.f32 %v321_v54, %v483_v0  ;;  %v177_v12 = vpop.xlane.xlu1 %176 }
 0x13e   :  { %289 = vst.msk [vmem:[%s669_s3 + $0x18] sm:$0xff] %vm32_vm0, %v273_v4  ;;  %v253_v13 = vmul.f32 %v547_v26, %v231_v5  ;;  %334 = vrsqrt.f32 %v207_v6  ;;  %v193_v14 = vmul.f32 0.03125, %v177_v12 }
 0x13f   :  { %v323_v15 = vpop.eup %322  ;;  %290 = vst.msk [vmem:[%s669_s3 + $0x20] sm:$0xff] %vm32_vm0, %v274_v8  ;;  %v254_v55 = vmul.f32 %v547_v26, %v232_v9  ;;  %336 = vrsqrt.f32 %v208_v7 }
 0x140   :  { %v325_v0 = vpop.eup %324  ;;  %v275_v18 = vadd.f32 %v553_v32, %v253_v13  ;;  %v233_v19 = vmul.f32 %v323_v15, %v486_v1  ;;  %v209_v22 = vadd.f32 1e-05, %v193_v14 }
 0x141   :  { %v276_v16 = vadd.f32 %v553_v32, %v254_v55  ;;  %v234_v27 = vmul.f32 %v325_v0, %v495_v10 }
 0x142   :  { %291 = vst.msk [vmem:[%s669_s3 + $0x28] sm:$0xff] %vm32_vm0, %v275_v18  ;;  %v255_v30 = vmul.f32 %v547_v26, %v233_v19  ;;  %338 = vrsqrt.f32 %v209_v22 }
 0x143   :  { %v327_v31 = vpop.eup %326  ;;  %292 = vst.msk [vmem:[%s669_s3 + $0x30] sm:$0xff] %vm32_vm0, %v276_v16  ;;  %v256_v1 = vmul.f32 %v547_v26, %v234_v27 }
 0x144   :  { %v329_v33 = vpop.eup %328  ;;  %v277_v34 = vadd.f32 %v553_v32, %v255_v30  ;;  %v235_v10 = vmul.f32 %v327_v31, %v498_v11 }
 0x145   :  { %v278_v20 = vadd.f32 %v553_v32, %v256_v1  ;;  %v236_v38 = vmul.f32 %v329_v33, %v507_v23 }
 0x146   :  { %293 = vst.msk [vmem:[%s669_s3 + $0x38] sm:$0xff] %vm32_vm0, %v277_v34  ;;  %v257_v39 = vmul.f32 %v547_v26, %v235_v10 }
 0x147   :  { %v331_v40 = vpop.eup %330  ;;  %294 = vst.msk [vmem:[%s669_s3 + $0x40] sm:$0xff] %vm32_vm0, %v278_v20  ;;  %v258_v41 = vmul.f32 %v547_v26, %v236_v38 }
 0x148   :  { %v333_v11 = vpop.eup %332  ;;  %v279_v42 = vadd.f32 %v553_v32, %v257_v39  ;;  %v237_v23 = vmul.f32 %v331_v40, %v510_v17 }
 0x149   :  { %v280_v36 = vadd.f32 %v553_v32, %v258_v41  ;;  %v238_v43 = vmul.f32 %v333_v11, %v519_v35 }
 0x14a   :  { %295 = vst.msk [vmem:[%s669_s3 + $0x48] sm:$0xff] %vm32_vm0, %v279_v42  ;;  %v259_v46 = vmul.f32 %v547_v26, %v237_v23 }
 0x14b   :  { %v335_v24 = vpop.eup %334  ;;  %296 = vst.msk [vmem:[%s669_s3 + $0x50] sm:$0xff] %vm32_vm0, %v280_v36  ;;  %v260_v48 = vmul.f32 %v547_v26, %v238_v43 }
 0x14c   :  { %v337_v17 = vpop.eup %336  ;;  %v281_v49 = vadd.f32 %v553_v32, %v259_v46  ;;  %v239_v35 = vmul.f32 %v335_v24, %v522_v21 }
 0x14d   :  { %v282_v50 = vadd.f32 %v553_v32, %v260_v48  ;;  %v240_v51 = vmul.f32 %v337_v17, %v531_v47 }
 0x14e   :  { %297 = vst.msk [vmem:[%s669_s3 + $0x58] sm:$0xff] %vm32_vm0, %v281_v49  ;;  %v261_v52 = vmul.f32 %v547_v26, %v239_v35 }
 0x14f   :  { %v339_v28 = vpop.eup %338  ;;  %298 = vst.msk [vmem:[%s669_s3 + $0x60] sm:$0xff] %vm32_vm0, %v282_v50  ;;  %v262_v29 = vmul.f32 %v547_v26, %v240_v51 }
 0x150   :  { %v283_v21 = vadd.f32 %v553_v32, %v261_v52  ;;  %v241_v44 = vmul.f32 %v339_v28, %v534_v25 }
 0x151   :  { %v284_v47 = vadd.f32 %v553_v32, %v262_v29 }
 0x152   :  { %299 = vst.msk [vmem:[%s669_s3 + $0x68] sm:$0xff] %vm32_vm0, %v283_v21  ;;  %v263_v53 = vmul.f32 %v547_v26, %v241_v44 }
 0x153   :  { %300 = vst.msk [vmem:[%s669_s3 + $0x70] sm:$0xff] %vm32_vm0, %v284_v47 }
 0x154   :  { %v285_v37 = vadd.f32 %v553_v32, %v263_v53 }
 0x156   :  { %301 = vst.msk [vmem:[%s669_s3 + $0x78] sm:$0xff] %vm32_vm0, %v285_v37 }

</bundles_post_ra>
